<compile_context>
chip_gen: v5e
topology: v5e:2x2
jax: 0.10.0
libtpu: 0.0.40
codegen_flags: <defaults>
</compile_context>

<pallas_src>
import functools
import math

import jax
import jax.numpy as jnp
from jax.experimental import pallas as pl
from jax.experimental.pallas import tpu as pltpu

SUBLANE = 8        # minimum row bucket (TPU sublane width)
TM_MAX = 1024      # row-block size for large batches: 4 f32 arrays x
                   # (1024 x 32) x 2 pipeline buffers ≈ 1 MiB, well under the
                   # 16 MiB scoped-VMEM default on v5e (32 MiB v6e/v7x).

# sigmoid(x) > 0.9  <=>  x > log(0.9 / 0.1).  Identical to the PyTorch
# sigmoid-then-threshold except for x exactly on the float boundary.
SIGMOID_09_LOGIT = math.log(0.9 / 0.1)


def _trainer_kernel(n_valid_ref, logits_ref, target_ref, tf_ref,
                    loss_ref, mem_ref, sum_ref, *, inv_c):
    """One (TM, C) row block: fused BCE-with-logits + dialog-memory update.

    n_valid_ref : (1,)     int32 SMEM -- number of valid (un-padded) pairs
    logits_ref  : (TM, C)  f32 VMEM   -- model logits per pair (outputs[0])
    target_ref  : (TM, C)  f32 VMEM   -- binary code targets per pair
    tf_ref      : (TM, 1)  f32 VMEM   -- per-pair teacher-forcing flag
    loss_ref    : (TM, 1)  f32 VMEM   -- per-pair mean loss (0 on pad rows)
    mem_ref     : (TM, C)  f32 VMEM   -- updated dialog-memory rows
    sum_ref     : (1, 1)   f32 SMEM   -- sum of losses over valid pairs
    """
    i = pl.program_id(0)
    tm = logits_ref.shape[0]

    x = logits_ref[...]
    z = target_ref[...]

    # Numerically stable BCE with logits (matches PyTorch):
    #   l = max(x, 0) - x*z + log(1 + exp(-|x|))
    per_elem = jnp.maximum(x, 0.0) - x * z + jnp.log1p(jnp.exp(-jnp.abs(x)))

    # Per-pair mean over the C code bits.
    per_row = jnp.sum(per_elem, axis=1, keepdims=True) * inv_c       # (TM, 1)

    # Runtime row-validity mask (padded rows would otherwise contribute log 2).
    n_valid = n_valid_ref[0]
    row_ids = i * tm + jax.lax.broadcasted_iota(jnp.int32, per_row.shape, 0)
    per_row = jnp.where(row_ids < n_valid, per_row, 0.0)

    loss_ref[...] = per_row

    # sum_loss accumulated across row blocks in SMEM (row axis is "arbitrary",
    # so the scalar carries; masked per_row -> padded rows contribute 0).
    @pl.when(i == 0)
    def _():
        sum_ref[0, 0] = 0.0

    sum_ref[0, 0] += jnp.sum(per_row)

    # Dialog-memory update:
    #   teacher forcing -> copy target
    #   otherwise       -> where(sigmoid(x) > 0.9, 1, 0)  ==  (x > log 9)
    thresholded = jnp.where(x > SIGMOID_09_LOGIT,
                            jnp.float32(1.0), jnp.float32(0.0))
    use_target = jnp.broadcast_to(tf_ref[...], x.shape) > 0.0
    mem_ref[...] = jnp.where(use_target, z, thresholded)


@jax.jit
def _trainer_steps_bucketed(n_valid, logits_p, targets_p, tf_p):
    """Pallas call on bucket-padded inputs (row count is a multiple of 8)."""
    n_pad, c = logits_p.shape
    tm = min(n_pad, TM_MAX)
    grid = (n_pad // tm,)
    kernel = functools.partial(_trainer_kernel, inv_c=1.0 / c)
    return pl.pallas_call(
        kernel,
        grid=grid,
        out_shape=(
            jax.ShapeDtypeStruct((n_pad, 1), jnp.float32),    # per-pair loss
            jax.ShapeDtypeStruct((n_pad, c), jnp.float32),    # new memory rows
            jax.ShapeDtypeStruct((1, 1), jnp.float32),        # sum of losses
        ),
        in_specs=[
            pl.BlockSpec(memory_space=pltpu.MemorySpace.SMEM),       # n_valid
            pl.BlockSpec((tm, c), lambda i: (i, 0)),                 # logits
            pl.BlockSpec((tm, c), lambda i: (i, 0)),                 # targets
            pl.BlockSpec((tm, 1), lambda i: (i, 0)),                 # tf flag
        ],
        out_specs=(
            pl.BlockSpec((tm, 1), lambda i: (i, 0)),                 # loss
            pl.BlockSpec((tm, c), lambda i: (i, 0)),                 # memory
            pl.BlockSpec(memory_space=pltpu.MemorySpace.SMEM),       # sum
        ),
        # Reuse the logits HBM buffer for the memory output (same shape &
        # dtype; logits are dead after the kernel).  Copy-free whenever the
        # padded logits are an intermediate of (or donated to) the jit.
        input_output_aliases={1: 1},
        compiler_params=pltpu.CompilerParams(
            # Row axis carries the SMEM sum accumulator -> "arbitrary".
            # TODO(synk): for very large N on v7x, emit per-block partial sums
            # instead and mark this axis "parallel" to use both TensorCores.
            dimension_semantics=("arbitrary",),
        ),
    )(n_valid, logits_p, targets_p, tf_p)


def trainer_steps(logits, targets, tf_flags):
    """All Trainer inner-loop numerical steps of one dialogue in ONE call.

    logits   : (N, C) f32 -- model(input, init_hidden, memory)[0] per pair
    targets  : (N, C) f32 -- binary code target per pair
    tf_flags : (N,)   int -- 1 => teacher forcing for that pair

    Returns (per_pair_loss (N,), sum_loss scalar, new_memory (N, C)).
    """
    n, c = logits.shape
    # Bucket the row count so a training loop with variable-length dialogues
    # compiles only a handful of shapes; the true length is a runtime scalar.
    bucket = SUBLANE if n <= TM_MAX else TM_MAX
    n_pad = pl.cdiv(n, bucket) * bucket
    pad = n_pad - n

    logits_p = jnp.pad(logits.astype(jnp.float32), ((0, pad), (0, 0)))
    targets_p = jnp.pad(targets.astype(jnp.float32), ((0, pad), (0, 0)))
    tf_p = jnp.pad(tf_flags.astype(jnp.float32)[:, None], ((0, pad), (0, 0)))
    n_valid = jnp.array([n], jnp.int32)

    loss_p, mem_p, sum_loss = _trainer_steps_bucketed(
        n_valid, logits_p, targets_p, tf_p)
    return loss_p[:n, 0], sum_loss[0, 0], mem_p[:n, :]


# ---------------------------------------------------------------------------
# Pure-JAX reference for correctness checking.
# ---------------------------------------------------------------------------
def trainer_steps_ref(logits, targets, tf_flags):
    x = logits.astype(jnp.float32)
    z = targets.astype(jnp.float32)
    per_elem = jnp.maximum(x, 0.0) - x * z + jnp.log1p(jnp.exp(-jnp.abs(x)))
    per_pair = jnp.mean(per_elem, axis=1)
    thresholded = jnp.where(jax.nn.sigmoid(x) > 0.9, 1.0, 0.0)
    mem = jnp.where(tf_flags[:, None] == 1, z, thresholded)
    return per_pair, jnp.sum(per_pair), mem


if __name__ == "__main__":
    # Small shapes consistent with the module: decoder.code_size -> C,
    # decoder.memory_size -> first MEM lanes of the code, one dialogue of
    # N_PAIRS (input, code) pairs batched into a single kernel call.
    CODE_SIZE = 32        # decoder.code_size
    MEMORY_SIZE = 8       # decoder.memory_size
    N_PAIRS = 6           # pairs in one synthetic dialogue

    # TODO(synk): the external seq2seq model forward, Adam optimizer steps,
    # backward pass, grad-norm clipping, vocab lookup and python-level noise
    # insertion have no clean Pallas equivalent; only the Trainer's own
    # numerical hot path (loss + dialog-memory update) is implemented here,
    # batched over all pairs of a dialogue.

    key = jax.random.PRNGKey(0)
    k_logit, k_tgt, k_tf = jax.random.split(key, 3)
    # Synthetic stand-in for model(input_variable, init_hidden, dialog_memory)[0]
    logits = jax.random.normal(k_logit, (N_PAIRS, CODE_SIZE), jnp.float32) * 3.0
    targets = jax.random.bernoulli(k_tgt, 0.5, (N_PAIRS, CODE_SIZE)).astype(jnp.float32)
    tf_flags = jax.random.bernoulli(k_tf, 0.5, (N_PAIRS,)).astype(jnp.int32)

    per_pair_loss, sum_loss, mem = trainer_steps(logits, targets, tf_flags)
    jax.block_until_ready((per_pair_loss, sum_loss, mem))

    ref_loss, ref_sum, ref_mem = trainer_steps_ref(logits, targets, tf_flags)
    assert jnp.allclose(per_pair_loss, ref_loss, atol=1e-5, rtol=1e-5), (
        per_pair_loss, ref_loss)
    assert jnp.allclose(sum_loss, ref_sum, atol=1e-5, rtol=1e-5), (sum_loss, ref_sum)
    assert jnp.allclose(mem, ref_mem, atol=1e-6), (mem, ref_mem)

    # dialog_memory carried to the next pair/dialogue = first memory_size
    # entries of the last pair's updated memory row (matches the PyTorch loop).
    dialog_memory = mem[-1, :MEMORY_SIZE]
    jax.block_until_ready((dialog_memory, sum_loss))
    print("KERNEL_OK")
</pallas_src>

<mosaic_0001>
module attributes {stable_mosaic.version = 11 : i64} {
  func.func @_trainer_kernel(%arg0: i32, %arg1: memref<1xi32, #tpu.memory_space<smem>>, %arg2: memref<8x32xf32, #tpu.memory_space<vmem>>, %arg3: memref<8x32xf32, #tpu.memory_space<vmem>>, %arg4: memref<8x1xf32, #tpu.memory_space<vmem>>, %arg5: memref<8x1xf32, #tpu.memory_space<vmem>>, %arg6: memref<8x32xf32, #tpu.memory_space<vmem>>, %arg7: memref<1x1xf32, #tpu.memory_space<smem>>) attributes {dimension_semantics = [#tpu.dimension_semantics<arbitrary>], iteration_bounds = array<i64: 1>, scalar_prefetch = 0 : i64, scratch_operands = 0 : i64, tpu.core_type = #tpu.core_type<tc>, window_params = [{transform_indices = @transform_0, window_bounds = array<i64: 1>}, {transform_indices = @transform_1, window_bounds = array<i64: 8, 32>}, {transform_indices = @transform_2, window_bounds = array<i64: 8, 32>}, {transform_indices = @transform_3, window_bounds = array<i64: 8, 1>}, {transform_indices = @transform_4, window_bounds = array<i64: 8, 1>}, {transform_indices = @transform_5, window_bounds = array<i64: 8, 32>}, {transform_indices = @transform_6, window_bounds = array<i64: 1, 1>}]} {
    %c0 = arith.constant 0 : index
    %c0_0 = arith.constant 0 : index
    %0 = vector.load %arg2[%c0, %c0_0] : memref<8x32xf32, #tpu.memory_space<vmem>>, vector<8x32xf32>
    %c0_1 = arith.constant 0 : index
    %c0_2 = arith.constant 0 : index
    %1 = vector.load %arg3[%c0_1, %c0_2] : memref<8x32xf32, #tpu.memory_space<vmem>>, vector<8x32xf32>
    %cst = arith.constant 0.000000e+00 : f32
    %2 = vector.broadcast %cst : f32 to vector<8x32xf32>
    %3 = arith.maximumf %0, %2 : vector<8x32xf32>
    %4 = arith.mulf %0, %1 : vector<8x32xf32>
    %5 = arith.subf %3, %4 : vector<8x32xf32>
    %6 = math.absf %0 : vector<8x32xf32>
    %cst_3 = arith.constant 0.000000e+00 : f32
    %7 = vector.broadcast %cst_3 : f32 to vector<8x32xf32>
    %8 = arith.subf %7, %6 : vector<8x32xf32>
    %9 = math.exp %8 : vector<8x32xf32>
    %10 = math.log1p %9 : vector<8x32xf32>
    %11 = arith.addf %5, %10 : vector<8x32xf32>
    %cst_4 = arith.constant dense<0.000000e+00> : vector<8xf32>
    %12 = vector.multi_reduction <add>, %11, %cst_4 [1] : vector<8x32xf32> to vector<8xf32>
    %13 = vector.shape_cast %12 : vector<8xf32> to vector<8x1xf32>
    %cst_5 = arith.constant 3.125000e-02 : f32
    %14 = vector.broadcast %cst_5 : f32 to vector<8x1xf32>
    %15 = arith.mulf %13, %14 : vector<8x1xf32>
    %c0_6 = arith.constant 0 : index
    %16 = memref.load %arg1[%c0_6] : memref<1xi32, #tpu.memory_space<smem>>
    %c8_i32 = arith.constant 8 : i32
    %17 = arith.muli %arg0, %c8_i32 : i32
    %18 = tpu.iota {dimensions = array<i32: 0>} : vector<8x1xi32>
    %19 = vector.broadcast %17 : i32 to vector<8x1xi32>
    %20 = arith.addi %19, %18 : vector<8x1xi32>
    %21 = vector.broadcast %16 : i32 to vector<8x1xi32>
    %22 = arith.cmpi slt, %20, %21 : vector<8x1xi32>
    %cst_7 = arith.constant 0.000000e+00 : f32
    %23 = vector.broadcast %cst_7 : f32 to vector<8x1xf32>
    %24 = arith.select %22, %15, %23 : vector<8x1xi1>, vector<8x1xf32>
    %c0_8 = arith.constant 0 : index
    %c0_9 = arith.constant 0 : index
    %25 = vector.load %arg5[%c0_8, %c0_9] : memref<8x1xf32, #tpu.memory_space<vmem>>, vector<8x1xf32>
    tpu.vector_store %arg5[%c0_8, %c0_9], %24 {strides = array<i32>} : memref<8x1xf32, #tpu.memory_space<vmem>>, vector<8x1xf32>,
    %c0_i32 = arith.constant 0 : i32
    %26 = arith.cmpi eq, %arg0, %c0_i32 : i32
    %27 = arith.extui %26 : i1 to i32
    %c0_i32_10 = arith.constant 0 : i32
    %28 = arith.cmpi ne, %27, %c0_i32_10 : i32
    scf.if %28 {
      %cst_24 = arith.constant 0.000000e+00 : f32
      %c0_25 = arith.constant 0 : index
      %c0_26 = arith.constant 0 : index
      %48 = memref.load %arg7[%c0_25, %c0_26] : memref<1x1xf32, #tpu.memory_space<smem>>
      memref.store %cst_24, %arg7[%c0_25, %c0_26] : memref<1x1xf32, #tpu.memory_space<smem>>
    } else {
    }
    %c0_11 = arith.constant 0 : index
    %c0_12 = arith.constant 0 : index
    %29 = memref.load %arg7[%c0_11, %c0_12] : memref<1x1xf32, #tpu.memory_space<smem>>
    %30 = vector.shape_cast %24 : vector<8x1xf32> to vector<1x8x1xf32>
    %cst_13 = arith.constant dense<0.000000e+00> : vector<1xf32>
    %31 = vector.multi_reduction <add>, %30, %cst_13 [1, 2] : vector<1x8x1xf32> to vector<1xf32>
    %32 = vector.shape_cast %31 : vector<1xf32> to vector<1x1x1xf32>
    %33 = vector.extract %32[0, 0, 0] : f32 from vector<1x1x1xf32>
    %34 = arith.addf %29, %33 : f32
    %c0_14 = arith.constant 0 : index
    %c0_15 = arith.constant 0 : index
    %35 = memref.load %arg7[%c0_14, %c0_15] : memref<1x1xf32, #tpu.memory_space<smem>>
    memref.store %34, %arg7[%c0_14, %c0_15] : memref<1x1xf32, #tpu.memory_space<smem>>
    %cst_16 = arith.constant 2.19722462 : f32
    %36 = vector.broadcast %cst_16 : f32 to vector<8x32xf32>
    %37 = arith.cmpf ogt, %0, %36 : vector<8x32xf32>
    %cst_17 = arith.constant 1.000000e+00 : f32
    %cst_18 = arith.constant 0.000000e+00 : f32
    %38 = vector.broadcast %cst_17 : f32 to vector<8x32xf32>
    %39 = vector.broadcast %cst_18 : f32 to vector<8x32xf32>
    %40 = arith.select %37, %38, %39 : vector<8x32xi1>, vector<8x32xf32>
    %c0_19 = arith.constant 0 : index
    %c0_20 = arith.constant 0 : index
    %41 = vector.load %arg4[%c0_19, %c0_20] : memref<8x1xf32, #tpu.memory_space<vmem>>, vector<8x1xf32>
    %42 = vector.shape_cast %41 : vector<8x1xf32> to vector<8x1xf32>
    %43 = vector.broadcast %42 : vector<8x1xf32> to vector<8x32xf32>
    %cst_21 = arith.constant 0.000000e+00 : f32
    %44 = vector.broadcast %cst_21 : f32 to vector<8x32xf32>
    %45 = arith.cmpf ogt, %43, %44 : vector<8x32xf32>
    %46 = arith.select %45, %1, %40 : vector<8x32xi1>, vector<8x32xf32>
    %c0_22 = arith.constant 0 : index
    %c0_23 = arith.constant 0 : index
    %47 = vector.load %arg6[%c0_22, %c0_23] : memref<8x32xf32, #tpu.memory_space<vmem>>, vector<8x32xf32>
    tpu.vector_store %arg6[%c0_22, %c0_23], %46 {strides = array<i32>} : memref<8x32xf32, #tpu.memory_space<vmem>>, vector<8x32xf32>,
    return
  }
  func.func @transform_0(%arg0: i32) -> i32 {
    %c0_i32 = arith.constant 0 : i32
    %c0_i32_0 = arith.constant 0 : i32
    return %c0_i32 : i32
  }
  func.func @transform_1(%arg0: i32) -> (i32, i32) {
    %c0_i32 = arith.constant 0 : i32
    %c0_i32_0 = arith.constant 0 : i32
    return %arg0, %c0_i32 : i32, i32
  }
  func.func @transform_2(%arg0: i32) -> (i32, i32) {
    %c0_i32 = arith.constant 0 : i32
    %c0_i32_0 = arith.constant 0 : i32
    return %arg0, %c0_i32 : i32, i32
  }
  func.func @transform_3(%arg0: i32) -> (i32, i32) {
    %c0_i32 = arith.constant 0 : i32
    %c0_i32_0 = arith.constant 0 : i32
    return %arg0, %c0_i32 : i32, i32
  }
  func.func @transform_4(%arg0: i32) -> (i32, i32) {
    %c0_i32 = arith.constant 0 : i32
    %c0_i32_0 = arith.constant 0 : i32
    return %arg0, %c0_i32 : i32, i32
  }
  func.func @transform_5(%arg0: i32) -> (i32, i32) {
    %c0_i32 = arith.constant 0 : i32
    %c0_i32_0 = arith.constant 0 : i32
    return %arg0, %c0_i32 : i32, i32
  }
  func.func @transform_6(%arg0: i32) -> (i32, i32) {
    %c0_i32 = arith.constant 0 : i32
    %c0_i32_0 = arith.constant 0 : i32
    %c0_i32_1 = arith.constant 0 : i32
    return %c0_i32, %c0_i32_0 : i32, i32
  }
}

</mosaic_0001>

<bundles_post_ra>
// kernel: _trainer_steps_bucketed.1
= control target key start
LH: loop header
LB: loop body
LE: loop exit
PB: predicated region body
PF: predicated region fallthrough
CT: control target
= control target key end

     0   :  { %s198_s0 = inlined_call_operand.<no memory space> [shape: s32[1], index: 0, kind: input, shape index: {}]   ;;  %s199_s1 = inlined_call_operand.vmem [shape: f32[8,32], index: 1, kind: input, shape index: {}, may-alias: {1,5}]   ;;  %s200_s2 = inlined_call_operand.vmem [shape: f32[8,32], index: 2, kind: input, shape index: {}]   ;;  %s201_s3 = inlined_call_operand.vmem [shape: f32[8,1], index: 3, kind: input, shape index: {}]   ;;  %s202_s4 = inlined_call_operand.vmem [shape: f32[8,1], index: 4, kind: output, shape index: {0}]   ;;  %s203_s5 = inlined_call_operand.vmem [shape: f32[8,32], index: 5, kind: output, shape index: {1}, may-alias: {1,5}]   ;;  %s204_s6 = inlined_call_operand.hbm [shape: f32[1,1], index: 6, kind: output, shape index: {2}]  }
   0x1   :  { %v22_v0 = vld [vmem:[%s199_s1] sm:$0xff] }
   0x2   :  { %13 = vsyncpa [#allocation4], 0  ;;  %v27_v1 = vand.u32 2147483647, %v22_v0  ;;  %v23_v7 = vld [vmem:[%s200_s2] sm:$0xff]  ;;  %v24_v9 = vmax.f32 %v22_v0, 0.0  ;;  %v48_v21 = vlaneseq  ;;  %v52_v23 = vstv %s198_s0 }
   0x3   :  { %v25_v10 = vmul.f32 %v23_v7, %v22_v0  ;;  %vm41_vm1 = vcmask 261120   ;;  %v79_v19 = vld [vmem:[%s201_s3] sm:$0xff]  ;;  %v137_v20 = vmov 0   ;;  %vm55_vm3 = vcmask 7168   ;;  %s97_s30 = sshll.u32 %s204_s6, 4  ;;  %s139_s8 = smov [#allocation3]   ;;  %s98_s30 = int_to_ptr.hbm [resolvable:$true] %s97_s30 }
   0x4   :  { %v28_v2 = vsub.f32 0.0, %v27_v1  ;;  %117 = vset.pattern.permute.xlu1 %v137_v20  ;;  %118 = vset.pattern.permute.xlu0 %v137_v20  ;;  %v49_v22 = vshrl.u32 %v48_v21, 7  ;;  %vm77_vm4 = vcmp.gt.f32.partialorder %v22_v0, 2.1972246  ;;  %v138_v36 = vmov 0.0  }
   0x5   :  { %v26_v14 = vsub.f32 %v24_v9, %v25_v10  ;;  %82 = vperm.xlu1 %117, %v79_v19   ;;  %v78_v37 = vsel %vm77_vm4, 1.0, %v138_v36 }
   0x6   :  { %v29_v3 = vmul.f32 1.442695, %v28_v2  ;;  %vm53_vm2 = vcmp.lt.s32.totalorder %v49_v22, %v52_v23 }
   0x8   :  { %119 = vpow2.f32 %v29_v3 }
   0xe   :  { %v120_v4 = vpop.eup %119 }
   0xf   :  { %v31_v5 = vadd.f32 1.0, %v120_v4  ;;  %v34_v6 = vmul.f32 -0.5, %v120_v4  ;;  %v37_v11 = vand.u32 2147483647, %v120_v4 }
  0x11   :  { %121 = vlog2.f32 %v31_v5  ;;  %v35_v8 = vadd.f32 1.0, %v34_v6  ;;  %vm38_vm0 = vcmp.lt.f32.partialorder %v37_v11, 0.0004427343 }
  0x13   :  { %v36_v12 = vmul.f32 %v120_v4, %v35_v8 }
  0x17   :  { %v122_v13 = vpop.eup %121 }
  0x18   :  { %v33_v15 = vmul.f32 0.6931472, %v122_v13 }
  0x1a   :  { %v39_v16 = vsel %vm38_vm0, %v36_v12, %v33_v15 }
  0x1b   :  { %v40_v17 = vadd.f32 %v39_v16, %v26_v14 }
  0x1d   :  { %v42_v18 = vsel %vm41_vm1, %v40_v17, 0.0 }
  0x1e   :  { %43 = vadd.xlane.f32.xlu0 %v42_v18 }
  0x77   :  { %v83_v35 = vpop.permute.xlu1 %82 }
  0x78   :  { %vm85_vm5 = vcmp.gt.f32.partialorder %v83_v35, 0.0 }
  0x79   :  { %v86_v38 = vsel %vm85_vm5, %v23_v7, %v78_v37 }
  0x7a   :  { %87 = vst.msk [vmem:[%s203_s5] sm:$0xff] %vm41_vm1, %v86_v38 }
  0x91   :  { %v44_v24 = vpop.xlane.xlu0 %43 }
  0x92   :  { %v45_v25 = vmul.f32 0.03125, %v44_v24 }
  0x94   :  { %v54_v26 = vsel %vm53_vm2, %v45_v25, 0.0 }
  0x95   :  { %v64_v27 = vsel %vm55_vm3, %v54_v26, 0.0  ;;  %56 = vst.msk [vmem:[%s202_s4] sm:$0xff] %vm55_vm3, %v54_v26 }
  0x96   :  { %65 = vadd.xlane.f32.xlu0 %v64_v27 }
 0x109   :  { %v66_v28 = vpop.xlane.xlu0 %65 }
 0x10a   :  { %v67_v29 = vrot.slane %v66_v28, 4 }
 0x10c   :  { %v68_v30 = vadd.f32 %v67_v29, %v66_v28 }
 0x10e   :  { %v69_v31 = vrot.slane %v68_v30, 2 }
 0x110   :  { %v70_v32 = vadd.f32 %v69_v31, %v68_v30 }
 0x112   :  { %v71_v33 = vrot.slane %v70_v32, 1 }
 0x114   :  { %v72_v34 = vadd.f32 %v71_v33, %v70_v32 }
 0x116   :  { %111 = vpush %v72_v34 }
 0x147   :  { %s112_s7 = spop %111 }
 0x148   :  { %76 = sst [smem:[#allocation3]] %s112_s7 }
 0x149   :  { %100 = dma.smem_to_hbm %s139_s8, 16, %s98_s30, [#allocation4]  }
 0x14a   :  { %135 = dma.done.wait [#allocation4], 16  }
 0x14b   :  { %136 = vsyncadd [#allocation4], 4294967280 }
 0x14c   :  { %109 = sfence }
 0x14d   :  { %110 = vsyncpa [#allocation4], 1 }

</bundles_post_ra>
